<compile_context>
chip_gen: v7x
topology: tpu7x:2x2x1
jax: 0.10.0
libtpu: 0.0.40
codegen_flags: <defaults>
</compile_context>

<pallas_src>
import functools

import jax
import jax.numpy as jnp
from jax.experimental import pallas as pl
from jax.experimental.pallas import tpu as pltpu


def _heavyball_kernel(gact_ref, sp_ref, x_ref, w_ref, b_ref, out_ref, *,
                      sign, mxu_dtype):
    # scalar parameters, already activated in the wrapper (SMEM)
    gact = gact_ref[0]          # sigmoid(gamma)
    sp = sp_ref[0]              # softplus(corr); ~0 for corr=-100 (frozen)

    h = x_ref[:, 0, :]          # [TB, D] lane-dense slab
    m = x_ref[:, 1, :]          # [TB, D]

    # df(t, h) = h @ W^T + b  (t unused by this df) -> MXU, f32 accumulation
    df = jnp.dot(h.astype(mxu_dtype), w_ref[...],
                 preferred_element_type=jnp.float32)
    df = df + b_ref[...]
    if sign != 1.0:             # static fold: sign == 1 in the default module
        df = sign * df

    out_ref[:, 0, :] = -m                        # dh = actv_h(-m), Identity
    out_ref[:, 1, :] = df - gact * m + sp * h    # dm


def heavyball_node_forward(t, x, w_t, b, gamma, corr, *, sign=1.0, tb=None,
                           use_bf16_mxu=False):
    """x: [B, 2, D] float32 -> out: [B, 2, D] float32.

    `t` mirrors the PyTorch signature but this linear df does not depend on it.
    `tb` is the batch tile; the batch grid axis is "parallel".
    `use_bf16_mxu=True` feeds the MXU bf16 operands (f32 accumulation) — the
    right setting for large D on v6e/v7x, off here to keep tight tolerances.
    """
    del t
    B, two, D = x.shape
    assert two == 2
    if tb is None:
        tb = B
    assert B % tb == 0, "batch must be divisible by the batch tile"
    n_tiles = B // tb

    # Activate the scalar parameters once in the wrapper (SMEM scalars inside).
    gact = jax.nn.sigmoid(gamma.astype(jnp.float32)).reshape((1,))
    sp = jax.nn.softplus(corr.astype(jnp.float32)).reshape((1,))

    mxu_dtype = jnp.bfloat16 if use_bf16_mxu else jnp.float32
    w_t = w_t.astype(mxu_dtype)   # bf16 also halves the (grid-resident) W DMA

    kernel = functools.partial(_heavyball_kernel, sign=float(sign),
                               mxu_dtype=mxu_dtype)

    return pl.pallas_call(
        kernel,
        out_shape=jax.ShapeDtypeStruct((B, 2, D), jnp.float32),
        grid_spec=pltpu.PrefetchScalarGridSpec(
            num_scalar_prefetch=0,
            grid=(n_tiles,),
            in_specs=[
                pl.BlockSpec(memory_space=pltpu.MemorySpace.SMEM),  # gact [1]
                pl.BlockSpec(memory_space=pltpu.MemorySpace.SMEM),  # sp   [1]
                pl.BlockSpec((tb, 2, D), lambda i: (i, 0, 0)),      # x tile
                pl.BlockSpec((D, D), lambda i: (0, 0)),             # W^T resident
                pl.BlockSpec((1, D), lambda i: (0, 0)),             # bias resident
            ],
            out_specs=pl.BlockSpec((tb, 2, D), lambda i: (i, 0, 0)),
        ),
        compiler_params=pltpu.CompilerParams(
            dimension_semantics=("parallel",)),
    )(gact, sp, x, w_t, b)


if __name__ == "__main__":
    key = jax.random.PRNGKey(0)
    kx, kw, kb = jax.random.split(key, 3)

    B, D = 16, 128   # batch (sublane axis, grid-tiled), dim (lane axis)
    TB = 8           # batch tile -> grid of 2 steps, W stays resident

    x = jax.random.normal(kx, (B, 2, D), dtype=jnp.float32)
    # deterministic "df" parameters: linear layer weight/bias
    w = jax.random.normal(kw, (D, D), dtype=jnp.float32) * 0.05  # torch Linear weight [out, in]
    w_t = w.T                                                    # kernel consumes W^T
    b = jax.random.normal(kb, (1, D), dtype=jnp.float32) * 0.01

    gamma = jnp.array([-3.0], dtype=jnp.float32)    # gamma_guess
    corr = jnp.array([-100.0], dtype=jnp.float32)   # corr (frozen)
    t = jnp.array([0.0], dtype=jnp.float32)

    out = heavyball_node_forward(t, x, w_t, b, gamma, corr, tb=TB)
    out = jax.block_until_ready(out)

    # pure-JAX reference
    h_ref, m_ref = x[:, 0, :], x[:, 1, :]
    df_ref = h_ref @ w_t + b
    dh_expect = -m_ref
    dm_expect = (df_ref
                 - jax.nn.sigmoid(gamma[0]) * m_ref
                 + jax.nn.softplus(corr[0]) * h_ref)
    expect = jnp.stack([dh_expect, dm_expect], axis=1)

    assert out.shape == (B, 2, D)
    assert jnp.allclose(out, expect, atol=1e-4, rtol=1e-4)

    print("KERNEL_OK")
</pallas_src>

<mosaic_0001>
module attributes {stable_mosaic.version = 11 : i64} {
  func.func @_heavyball_kernel(%arg0: i32, %arg1: memref<1xf32, #tpu.memory_space<smem>>, %arg2: memref<1xf32, #tpu.memory_space<smem>>, %arg3: memref<8x2x128xf32, #tpu.memory_space<vmem>>, %arg4: memref<128x128xf32, #tpu.memory_space<vmem>>, %arg5: memref<1x128xf32, #tpu.memory_space<vmem>>, %arg6: memref<8x2x128xf32, #tpu.memory_space<vmem>>) attributes {dimension_semantics = [#tpu.dimension_semantics<parallel>], iteration_bounds = array<i64: 2>, scalar_prefetch = 0 : i64, scratch_operands = 0 : i64, tpu.core_type = #tpu.core_type<tc>, window_params = [{transform_indices = @transform_0, window_bounds = array<i64: 1>}, {transform_indices = @transform_1, window_bounds = array<i64: 1>}, {transform_indices = @transform_2, window_bounds = array<i64: 8, 2, 128>}, {pipeline_mode = #tpu.pipeline_mode<synchronous>, transform_indices = @transform_3, window_bounds = array<i64: 128, 128>}, {pipeline_mode = #tpu.pipeline_mode<synchronous>, transform_indices = @transform_4, window_bounds = array<i64: 1, 128>}, {transform_indices = @transform_5, window_bounds = array<i64: 8, 2, 128>}]} {
    %c0 = arith.constant 0 : index
    %0 = memref.load %arg1[%c0] : memref<1xf32, #tpu.memory_space<smem>>
    %c0_0 = arith.constant 0 : index
    %1 = memref.load %arg2[%c0_0] : memref<1xf32, #tpu.memory_space<smem>>
    %c0_1 = arith.constant 0 : index
    %c0_2 = arith.constant 0 : index
    %c0_3 = arith.constant 0 : index
    %2 = vector.load %arg3[%c0_1, %c0_2, %c0_3] : memref<8x2x128xf32, #tpu.memory_space<vmem>>, vector<8x1x128xf32>
    %3 = vector.shape_cast %2 : vector<8x1x128xf32> to vector<8x128xf32>
    %c0_4 = arith.constant 0 : index
    %c1 = arith.constant 1 : index
    %c0_5 = arith.constant 0 : index
    %4 = vector.load %arg3[%c0_4, %c1, %c0_5] : memref<8x2x128xf32, #tpu.memory_space<vmem>>, vector<8x1x128xf32>
    %5 = vector.shape_cast %4 : vector<8x1x128xf32> to vector<8x128xf32>
    %c0_6 = arith.constant 0 : index
    %c0_7 = arith.constant 0 : index
    %6 = vector.load %arg4[%c0_6, %c0_7] : memref<128x128xf32, #tpu.memory_space<vmem>>, vector<128x128xf32>
    %cst = arith.constant dense<0.000000e+00> : vector<8x128xf32>
    %7 = tpu.matmul %3, %6, %cst {dimension_numbers = #tpu.dot_dimension_numbers<[1], [0], [0], [1], [0, 0, 1, 1], [], []>} : vector<8x128xf32>, vector<128x128xf32>, vector<8x128xf32> -> vector<8x128xf32>
    %c0_8 = arith.constant 0 : index
    %c0_9 = arith.constant 0 : index
    %8 = vector.load %arg5[%c0_8, %c0_9] : memref<1x128xf32, #tpu.memory_space<vmem>>, vector<1x128xf32>
    %9 = vector.broadcast %8 : vector<1x128xf32> to vector<8x128xf32>
    %10 = arith.addf %7, %9 : vector<8x128xf32>
    %cst_10 = arith.constant 0.000000e+00 : f32
    %11 = vector.broadcast %cst_10 : f32 to vector<8x128xf32>
    %12 = arith.subf %11, %5 : vector<8x128xf32>
    %c0_11 = arith.constant 0 : index
    %c0_12 = arith.constant 0 : index
    %c0_13 = arith.constant 0 : index
    %13 = vector.load %arg6[%c0_11, %c0_12, %c0_13] : memref<8x2x128xf32, #tpu.memory_space<vmem>>, vector<8x1x128xf32>
    %14 = vector.shape_cast %13 : vector<8x1x128xf32> to vector<8x128xf32>
    %15 = vector.shape_cast %12 : vector<8x128xf32> to vector<8x1x128xf32>
    tpu.vector_store %arg6[%c0_11, %c0_12, %c0_13], %15 {strides = array<i32>} : memref<8x2x128xf32, #tpu.memory_space<vmem>>, vector<8x1x128xf32>,
    %16 = vector.broadcast %0 : f32 to vector<8x128xf32>
    %17 = arith.mulf %16, %5 : vector<8x128xf32>
    %18 = arith.subf %10, %17 : vector<8x128xf32>
    %19 = vector.broadcast %1 : f32 to vector<8x128xf32>
    %20 = arith.mulf %19, %3 : vector<8x128xf32>
    %21 = arith.addf %18, %20 : vector<8x128xf32>
    %c0_14 = arith.constant 0 : index
    %c1_15 = arith.constant 1 : index
    %c0_16 = arith.constant 0 : index
    %22 = vector.load %arg6[%c0_14, %c1_15, %c0_16] : memref<8x2x128xf32, #tpu.memory_space<vmem>>, vector<8x1x128xf32>
    %23 = vector.shape_cast %22 : vector<8x1x128xf32> to vector<8x128xf32>
    %24 = vector.shape_cast %21 : vector<8x128xf32> to vector<8x1x128xf32>
    tpu.vector_store %arg6[%c0_14, %c1_15, %c0_16], %24 {strides = array<i32>} : memref<8x2x128xf32, #tpu.memory_space<vmem>>, vector<8x1x128xf32>,
    return
  }
  func.func @transform_0(%arg0: i32) -> i32 {
    %c0_i32 = arith.constant 0 : i32
    %c0_i32_0 = arith.constant 0 : i32
    return %c0_i32 : i32
  }
  func.func @transform_1(%arg0: i32) -> i32 {
    %c0_i32 = arith.constant 0 : i32
    %c0_i32_0 = arith.constant 0 : i32
    return %c0_i32 : i32
  }
  func.func @transform_2(%arg0: i32) -> (i32, i32, i32) {
    %c0_i32 = arith.constant 0 : i32
    %c0_i32_0 = arith.constant 0 : i32
    %c0_i32_1 = arith.constant 0 : i32
    return %arg0, %c0_i32, %c0_i32_0 : i32, i32, i32
  }
  func.func @transform_3(%arg0: i32) -> (i32, i32) {
    %c0_i32 = arith.constant 0 : i32
    %c0_i32_0 = arith.constant 0 : i32
    %c0_i32_1 = arith.constant 0 : i32
    return %c0_i32, %c0_i32_0 : i32, i32
  }
  func.func @transform_4(%arg0: i32) -> (i32, i32) {
    %c0_i32 = arith.constant 0 : i32
    %c0_i32_0 = arith.constant 0 : i32
    %c0_i32_1 = arith.constant 0 : i32
    return %c0_i32, %c0_i32_0 : i32, i32
  }
  func.func @transform_5(%arg0: i32) -> (i32, i32, i32) {
    %c0_i32 = arith.constant 0 : i32
    %c0_i32_0 = arith.constant 0 : i32
    %c0_i32_1 = arith.constant 0 : i32
    return %arg0, %c0_i32, %c0_i32_0 : i32, i32, i32
  }
}

</mosaic_0001>

<bundles_post_ra>
// kernel: tpu_custom_call.1
= control target key start
LH: loop header
LB: loop body
LE: loop exit
PB: predicated region body
PF: predicated region fallthrough
CT: control target
= control target key end

     0   :  { %s1271_s0 = inlined_call_operand.<no memory space> [shape: f32[1], index: 0, kind: input, shape index: {}]   ;;  %s1272_s1 = inlined_call_operand.<no memory space> [shape: f32[1], index: 1, kind: input, shape index: {}]   ;;  %s1273_s2 = inlined_call_operand.hbm [shape: f32[16,2,128], index: 2, kind: input, shape index: {}]   ;;  %s1274_s3 = inlined_call_operand.hbm [shape: f32[128,128], index: 3, kind: input, shape index: {}]   ;;  %s1275_s4 = inlined_call_operand.vmem [shape: f32[1,128], index: 4, kind: input, shape index: {}]   ;;  %s1276_s5 = inlined_call_operand.hbm [shape: f32[16,2,128], index: 5, kind: output, shape index: {}]  }
   0x1   :  { %10 = sst [smem:[#allocation2]] %s1271_s0 }
   0x2   :  { %11 = sst [smem:[#allocation3]] %s1272_s1 }
   0x3   :  { %12 = vsyncpa [#allocation5], 0 }
   0x4   :  { %14 = vsyncpa [#allocation5 + $0x1], 0 }
   0x5   :  { %15 = vsyncpa [#allocation8], 0 }
   0x6   :  { %16 = vsyncpa [#allocation6], 0 }
   0x7   :  { %18 = vsyncpa [#allocation6 + $0x1], 0  ;;  %s993_s22 = smov 0   ;;  %s995_s23 = smov 0  }
   0x8   :  { %s997_s24 = smov 0   ;;  %s999_s25 = smov 0  }
   0x9 LB: > { %s1014_s0 = sadd.s32 4294967295, %s942_s25   ;;  %s648_s1 = sadd.s32 4294967294, %s942_s25   ;;  %s942_s25 = sphi %s999_s25, %s1296_s25   ;;  %s938_s24 = sphi %s997_s24, %s1295_s24   ;;  %s934_s23 = sphi %s995_s23, %s1294_s23   ;;  %s930_s22 = sphi %s993_s22, %s1293_s22  }
   0xa   : > { %p86_p0 = scmp.ne.s32.totalorder %s934_s23, %s930_s22  ;;  %p1277_p1 = scmp.eq.s32.totalorder %s1014_s0, 0 }
   0xb   : > { %p158_p3 = scmp.eq.s32.totalorder %s648_s1, 1  ;;  %p649_p5 = scmp.ge.s32.totalorder %s942_s25, 1 }
   0xc   : > { %p1023_p4 = por %p1277_p1, %p86_p0  ;;  %p165_p7 = scmp.lt.s32.totalorder %s942_s25, 3 }
   0xd   : > { %p1028_p6 = por %p158_p3, %p86_p0  ;;  %s944_s29 = smov [#allocation7]  }
   0xe   : > { %s1280_s26 = scalar_select %p1023_p4, 1, 0 }
   0xf   : > { %s1281_s27 = scalar_select %p1028_p6, 1, 0 }
  0x10   : > { %p1033_p8 = pnand %p649_p5, %p165_p7  ;;  %s183_s30 = sshll.u32 %s944_s29, 4  ;;  %s1037_s30 = int_to_ptr.vmem [resolvable:$true] %s183_s30 }
  0x11   : > { %s1049_s7 = sadd.s32 1, %s942_s25   ;;  %s73_s8 = sadd.s32 1, %s938_s24 }
  0x12   : > { %s1282_s28 = scalar_select %p1033_p8, 1, 0 }
  0x13   : > { %p755_p9 = pneg %p1033_p8  ;;  %s70_s9 = ssub.s32 %s942_s25, %s1049_s7 }
  0x14   : > { %s814_s12 = scalar_lea.hbm %s1274_s3, 2048 }
  0x15   : > { %p1044_p11 = pnand %p755_p9, %p1277_p1  ;;  %p815_p12 = scmp.ne.s32.totalorder %s1274_s3, %s814_s12 }
  0x16   : > { %p821_p5 = scmp.lt.u32.totalorder %s814_s12, %s1274_s3 }
  0x17   : > { %p816_p13 = pneg %p1044_p11 }
  0x19   : > { %p817_p0 = pnand %p816_p13, %p815_p12 }
  0x1b   : > { %p818_p3 = pneg %p817_p0 }
  0x1d   : > { %p823_p7 = pnand %p821_p5, %p818_p3 }
  0x1f   : > { %826 = shalt.err (!%p823_p7)
}
  0x20   : > { %s827_s17 = scalar_lea.vmem %s1037_s30, 2048  ;;  %p835_p2 = scmp.lt.s32.totalorder %s1037_s30, %s1037_s30 }
  0x21   : > { %p828_p9 = scmp.ne.s32.totalorder %s1037_s30, %s827_s17  ;;  %p836_p6 = scmp.lt.s32.totalorder %s827_s17, %s827_s17 }
  0x23   : > { %p830_p10 = pnand %p828_p9, %p816_p13  ;;  %p837_p4 = por %p836_p6, %p835_p2 }
  0x25   : > { %p831_p1 = pneg %p830_p10 }
  0x27   : > { %p838_p8 = pnand %p837_p4, %p831_p1 }
  0x29   : > { %841 = shalt.err (!%p838_p8)
}
  0x2a   : > { %s945_s18 = smov 128   ;;  %s946_s19 = smov 8  }
  0x2b   : > { %758 = dma.hbm_to_vmem [thread:$0]  (!%p1044_p11), %s1274_s3, 2048, %s1037_s30, [#allocation8], %s945_s18, %s945_s18, %s946_s19  }
  0x2c   : > { %p71_p2 = scmp.eq.s32.totalorder %s70_s9, 0  ;;  %p80_p1 = scmp.ne.s32.totalorder %s938_s24, %s934_s23 }
  0x2d   : > { %p81_p4 = scmp.eq.s32.totalorder %s942_s25, 0  ;;  %p768_p6 = scmp.lt.s32.totalorder %s942_s25, 2 }
  0x2e   : > { %s1080_s1 = scalar_select %p71_p2, %s938_s24, %s73_s8  }
  0x2f   : > { %p82_p8 = por %p81_p4, %p80_p1  ;;  %p1284_p10 = scmp.eq.s32.totalorder %s1014_s0, 1 }
  0x30   : > { %s200_s10 = sand.u32 1, %s938_s24   ;;  %s669_s11 = sshll.u32 %s942_s25, 8 }
  0x31   : > { %p1084_p12 = por %p1284_p10, %p80_p1  ;;  %s652_s12 = sshll.u32 %s200_s10, 4 }
  0x32   : > { %s1093_s14 = scalar_lea.hbm %s1273_s2, %s669_s11  ;;  %s204_s30 = scalar_lea.vmem [#allocation4], %s652_s12 }
  0x33   : > { %s211_s8 = sshll.u32 %s204_s30, 4  ;;  %p1095_p11 = pnand %p768_p6, %p82_p8  ;;  %s1099_s8 = int_to_ptr.vmem [resolvable:$true] %s211_s8 }
  0x34   : > { %s1101_s15 = scalar_lea.sflag [#allocation5], %s200_s10  ;;  %s842_s16 = scalar_lea.hbm %s1093_s14, 256 }
  0x35   : > { %p843_p13 = scmp.ne.s32.totalorder %s1093_s14, %s842_s16  ;;  %p844_p0 = pneg %p1095_p11 }
  0x36   : > { %s847_s19 = scalar_lea.hbm %s1273_s2, 512  ;;  %p848_p7 = scmp.lt.u32.totalorder %s1093_s14, %s1273_s2 }
  0x37   : > { %p845_p3 = pnand %p844_p0, %p843_p13  ;;  %p849_p9 = scmp.lt.u32.totalorder %s847_s19, %s842_s16 }
  0x38   : > { %p851_p1 = scmp.lt.u32.totalorder %s842_s16, %s1093_s14 }
  0x39   : > { %p846_p5 = pneg %p845_p3  ;;  %p850_p2 = por %p849_p9, %p848_p7 }
  0x3b   : > { %p852_p4 = por %p851_p1, %p850_p2 }
  0x3d   : > { %p853_p6 = pnand %p852_p4, %p846_p5 }
  0x3f   : > { %856 = shalt.err (!%p853_p6)
}
  0x40   : > { %s857_s10 = scalar_lea.vmem %s1099_s8, 256  ;;  %s947_s11 = smov [#allocation4]  }
  0x41   : > { %p858_p8 = scmp.ne.s32.totalorder %s1099_s8, %s857_s10  ;;  %s862_s12 = sshll.u32 %s947_s11, 4  ;;  %s863_s12 = int_to_ptr.vmem [resolvable:$false] %s862_s12 }
  0x42   : > { %s864_s6 = scalar_lea.vmem %s863_s12, 512  ;;  %p865_p3 = scmp.lt.s32.totalorder %s1099_s8, %s863_s12 }
  0x43   : > { %p860_p10 = pnand %p858_p8, %p844_p0  ;;  %p866_p7 = scmp.lt.s32.totalorder %s864_s6, %s857_s10 }
  0x45   : > { %p861_p13 = pneg %p860_p10  ;;  %p867_p9 = por %p866_p7, %p865_p3 }
  0x47   : > { %p868_p2 = pnand %p867_p9, %p861_p13 }
  0x49   : > { %871 = shalt.err (!%p868_p2)
}
  0x4a   : > { %s948_s13 = smov 32   ;;  %s949_s30 = smov 2  }
  0x4b   : > { %762 = dma.hbm_to_vmem [thread:$0]  (!%p1095_p11), %s1093_s14, 256, %s1099_s8, %s1101_s15, %s948_s13, %s948_s13, %s949_s30  }
  0x4c   : > { %p1287_p0 = scmp.ne.s32.totalorder %s1282_s28, 0 }
  0x4d   : > { %s1132_s16 = sand.u32 (!%p1287_p0), 1, %s934_s23   ;;  %p1288_p5 = scmp.ne.s32.totalorder (!%p1287_p0), %s1280_s26, 0 }
  0x4e   : > { %223 = sbr.rel (%p1287_p0) target bundleno = 366 (0x16e), region = 40  ;;  %s656_s17 = sshll.u32 (!%p1287_p0), %s1132_s16, 4 }
  0x4f   : > { %s226_s18 = scalar_lea.sflag (!%p1287_p0), [#allocation5], %s1132_s16  ;;  %s1138_s19 = scalar_lea.vmem (!%p1287_p0), [#allocation4], %s656_s17 }
  0x55   : > { %917 = dma.done.wait (%p1288_p5), %s226_s18, 256  }
  0x56   : > { %919 = vsyncadd (%p1288_p5), %s226_s18, 4294967040  ;;  %p1289_p11 = scmp.eq.s32.totalorder %s1014_s0, 0 }
  0x58   : > { %921 = dma.done.wait (%p1289_p11), [#allocation8], 2048   ;;  %p1290_p1 = pmov %p1289_p11 }
  0x59   : > { %v950_v0 = vmov 0.0|0.0   ;;  %vm951_vm0 = vmmov 0   ;;  %v952_v1 = vmov 0.0   ;;  %v280_v2 = vld [vmem:[#allocation7] sm:$0xff]  ;;  %v281_v3 = vld [vmem:[#allocation7 + $0x8] sm:$0xff]  ;;  %v282_v4 = vld [vmem:[#allocation7 + $0x10] sm:$0xff] }
  0x5a   : > { %923 = vsyncadd (%p1290_p1), [#allocation8], 4294965248  ;;  %723 = vmatprep.subr.bf16.mxu0 %v950_v0  ;;  %720 = vmatprep.mubr.msk.f32.mxu0 %vm951_vm0, %v952_v1  ;;  %v724_v5 = vpack.c.bf16 %v281_v3, %v280_v2  ;;  %v283_v6 = vld [vmem:[#allocation7 + $0x18] sm:$0xff]  ;;  %v284_v8 = vld [vmem:[#allocation7 + $0x20] sm:$0xff]  ;;  %vm312_vm1 = vcmask 1041409   ;;  %vm315_vm2 = vcmask 1042434  }
  0x5b   : > { %v727_v7 = vpack.c.bf16 %v283_v6, %v282_v4  ;;  %v285_v9 = vld [vmem:[#allocation7 + $0x28] sm:$0xff]  ;;  %v1151_v10 = vld [vmem:[%s1138_s19 + $0x2] sm:$0x1]  ;;  %v287_v13 = vld [vmem:[#allocation7 + $0x38] sm:$0xff]  ;;  %vm318_vm3 = vcmask 1043459   ;;  %vm321_vm4 = vcmask 1044484  }
  0x5c   : > { %725 = vmatpush3.bf16.msra.mxu0 %v724_v5  ;;  %v730_v11 = vpack.c.bf16 %v285_v9, %v284_v8  ;;  %v286_v12 = vld [vmem:[#allocation7 + $0x30] sm:$0xff]  ;;  %v311_v15 = vrot.slane %v1151_v10, 7  ;;  %v288_v18 = vld [vmem:[#allocation7 + $0x40] sm:$0xff]  ;;  %v289_v19 = vld [vmem:[#allocation7 + $0x48] sm:$0xff]  ;;  %vm324_vm5 = vcmask 1045509   ;;  %vm327_vm6 = vcmask 1046534  }
  0x5d   : > { %726 = vmatprep.subr.bf16.mxu0 %v950_v0  ;;  %v266_v14 = vld [vmem:[%s1138_s19 + $0x4] sm:$0x1]  ;;  %v264_v16 = vld [vmem:[%s1138_s19] sm:$0x1]  ;;  %v733_v17 = vpack.c.bf16 %v287_v13, %v286_v12  ;;  %v267_v20 = vld [vmem:[%s1138_s19 + $0x6] sm:$0x1]  ;;  %v736_v23 = vpack.c.bf16 %v289_v19, %v288_v18 }
  0x5e   : > { %v314_v21 = vrot.slane %v266_v14, 6  ;;  %v313_v22 = vsel %vm312_vm1, %v311_v15, %v264_v16  ;;  %v268_v24 = vld [vmem:[%s1138_s19 + $0x8] sm:$0x1]  ;;  %v317_v25 = vrot.slane %v267_v20, 5  ;;  %v290_v26 = vld [vmem:[#allocation7 + $0x50] sm:$0xff]  ;;  %v292_v33 = vld [vmem:[#allocation7 + $0x60] sm:$0xff] }
  0x5f   : > { %v291_v27 = vld [vmem:[#allocation7 + $0x58] sm:$0xff]  ;;  %v320_v30 = vrot.slane %v268_v24, 4  ;;  %v293_v34 = vld [vmem:[#allocation7 + $0x68] sm:$0xff]  ;;  %v294_v39 = vld [vmem:[#allocation7 + $0x70] sm:$0xff]  ;;  %vm330_vm7 = vcmask 1047559   ;;  %s263_s26 = sld [smem:[#allocation3]] }
  0x60   : > { %728 = vmatpush3.bf16.msra.mxu0 %v727_v7  ;;  %v316_v28 = vsel %vm315_vm2, %v314_v21, %v313_v22  ;;  %v269_v29 = vld [vmem:[%s1138_s19 + $0xa] sm:$0x1]  ;;  %v739_v31 = vpack.c.bf16 %v291_v27, %v290_v26  ;;  %v270_v35 = vld [vmem:[%s1138_s19 + $0xc] sm:$0x1]  ;;  %v742_v38 = vpack.c.bf16 %v293_v34, %v292_v33  ;;  %v271_v41 = vld [vmem:[%s1138_s19 + $0xe] sm:$0x1] }
  0x61   : > { %729 = vmatprep.subr.bf16.mxu0 %v950_v0  ;;  %v319_v32 = vsel %vm318_vm3, %v317_v25, %v316_v28  ;;  %v323_v36 = vrot.slane %v269_v29, 3  ;;  %v295_v40 = vld [vmem:[#allocation7 + $0x78] sm:$0xff]  ;;  %v326_v42 = vrot.slane %v270_v35, 2  ;;  %v329_v45 = vrot.slane %v271_v41, 1  ;;  %s262_s28 = sld [smem:[#allocation2]]  ;;  %s1193_s14 = scalar_lea.vmem [#allocation9], %s656_s17 }
  0x62   : > { %v322_v37 = vsel %vm321_vm4, %v320_v30, %v319_v32  ;;  %v745_v44 = vpack.c.bf16 %v295_v40, %v294_v39  ;;  %v273_v49 = vld [vmem:[%s1138_s19 + $0x3] sm:$0x1]  ;;  %v274_v51 = vld [vmem:[%s1138_s19 + $0x5] sm:$0x1]  ;;  %v272_v54 = vld [vmem:[%s1138_s19 + $0x1] sm:$0x1] }
  0x63   : > { %v325_v43 = vsel %vm324_vm5, %v323_v36, %v322_v37  ;;  %v275_v55 = vld [vmem:[%s1138_s19 + $0x7] sm:$0x1]  ;;  %v276_v59 = vld [vmem:[%s1138_s19 + $0x9] sm:$0x1]  ;;  %v278_v3 = vld [vmem:[%s1138_s19 + $0xd] sm:$0x1] }
  0x64   : > { %731 = vmatpush3.bf16.msra.mxu0 %v730_v11  ;;  %v328_v46 = vsel %vm327_vm6, %v326_v42, %v325_v43  ;;  %v279_v9 = vld [vmem:[%s1138_s19 + $0xf] sm:$0x1]  ;;  %v403_v32 = vsub.f32 0.0, %v272_v54  ;;  %v404_v33 = vsub.f32 0.0, %v273_v49  ;;  %v405_v34 = vsub.f32 0.0, %v274_v51  ;;  %s670_s15 = sshll.u32 %s1014_s0, 8 }
  0x65   : > { %732 = vmatprep.subr.bf16.mxu0 %v950_v0  ;;  %v331_v47 = vsel %vm330_vm7, %v329_v45, %v328_v46  ;;  %v452_v48 = vstv %s263_s26  ;;  %v407_v36 = vsub.f32 0.0, %v276_v59  ;;  %v410_v39 = vsub.f32 0.0, %v279_v9  ;;  %s565_s20 = sshll.u32 %s1193_s14, 4  ;;  %s1222_s11 = scalar_lea.hbm %s1276_s5, %s670_s15  ;;  %s1224_s20 = int_to_ptr.vmem [resolvable:$true] %s565_s20 }
  0x66   : > { %v454_v50 = vmul.f32 %v452_v48, %v1151_v10  ;;  %v455_v52 = vmul.f32 %v452_v48, %v266_v14  ;;  %v456_v53 = vmul.f32 %v452_v48, %v267_v20  ;;  %v453_v57 = vmul.f32 %v452_v48, %v264_v16  ;;  %411 = vst [vmem:[%s1193_s14] sm:$0x1] %v403_v32  ;;  %s552_s0 = scalar_lea.sflag [#allocation6], %s1132_s16  ;;  %s872_s12 = scalar_lea.vmem %s1224_s20, 256 }
  0x67   : > { %v419_v56 = vstv %s262_s28  ;;  %v457_v58 = vmul.f32 %v452_v48, %v268_v24  ;;  %v458_v61 = vmul.f32 %v452_v48, %v269_v29  ;;  %v459_v62 = vmul.f32 %v452_v48, %v270_v35  ;;  %412 = vst [vmem:[%s1193_s14 + $0x2] sm:$0x1] %v404_v33  ;;  %413 = vst [vmem:[%s1193_s14 + $0x4] sm:$0x1] %v405_v34  ;;  %p873_p4 = scmp.ne.s32.totalorder %s1224_s20, %s872_s12  ;;  %s954_s6 = smov [#allocation9]  }
  0x68   : > { %734 = vmatpush3.bf16.msra.mxu0 %v733_v17  ;;  %v421_v60 = vmul.f32 %v419_v56, %v273_v49  ;;  %v460_v63 = vmul.f32 %v452_v48, %v271_v41  ;;  %v422_v1 = vmul.f32 %v419_v56, %v274_v51  ;;  %v469_v2 = vrot.slane %v454_v50, 7  ;;  %415 = vst [vmem:[%s1193_s14 + $0x8] sm:$0x1] %v407_v36  ;;  %v659_v49 = vld [vmem:[%s1275_s4] ss:$0 sm:$0xff]  ;;  %s876_s13 = sshll.u32 %s954_s6, 4  ;;  %s877_s13 = int_to_ptr.vmem [resolvable:$false] %s876_s13 }
  0x69   : > { %735 = vmatprep.subr.bf16.mxu0 %v950_v0  ;;  %v420_v4 = vmul.f32 %v419_v56, %v272_v54  ;;  %v423_v5 = vmul.f32 %v419_v56, %v275_v55  ;;  %v471_v7 = vrot.slane %v455_v52, 6  ;;  %v473_v8 = vrot.slane %v456_v53, 5  ;;  %418 = vst [vmem:[%s1193_s14 + $0xe] sm:$0x1] %v410_v39  ;;  %p874_p6 = pnand %p873_p4, %p1084_p12  ;;  %s878_s30 = scalar_lea.vmem %s877_s13, 512 }
  0x6a   : > { %v436_v6 = vrot.slane %v421_v60, 7  ;;  %v424_v10 = vmul.f32 %v419_v56, %v276_v59  ;;  %v438_v11 = vrot.slane %v422_v1, 6  ;;  %v475_v12 = vrot.slane %v457_v58, 4  ;;  %p879_p10 = scmp.lt.s32.totalorder %s1224_s20, %s877_s13  ;;  %p880_p13 = scmp.lt.s32.totalorder %s878_s30, %s872_s12 }
  0x6b   : > { %v440_v15 = vrot.slane %v423_v5, 5  ;;  %v477_v16 = vrot.slane %v458_v61, 3  ;;  %v426_v17 = vmul.f32 %v419_v56, %v278_v3  ;;  %v427_v20 = vmul.f32 %v419_v56, %v279_v9  ;;  %p875_p8 = pneg %p874_p6 }
  0x6c   : > { %737 = vmatpush3.bf16.msra.mxu0 %v736_v23  ;;  %v437_v14 = vsel %vm312_vm1, %v436_v6, %v420_v4  ;;  %v442_v19 = vrot.slane %v424_v10, 4  ;;  %v470_v23 = vsel %vm312_vm1, %v469_v2, %v453_v57  ;;  %v479_v24 = vrot.slane %v459_v62, 2  ;;  %p881_p3 = por %p880_p13, %p879_p10 }
  0x6d   : > { %738 = vmatprep.subr.bf16.mxu0 %v950_v0  ;;  %v439_v18 = vsel %vm315_vm2, %v438_v11, %v437_v14  ;;  %v446_v26 = vrot.slane %v426_v17, 2  ;;  %v472_v27 = vsel %vm315_vm2, %v471_v7, %v470_v23  ;;  %v481_v28 = vrot.slane %v460_v63, 1 }
  0x6e   : > { %v441_v21 = vsel %vm318_vm3, %v440_v15, %v439_v18  ;;  %v448_v30 = vrot.slane %v427_v20, 1  ;;  %v406_v35 = vsub.f32 0.0, %v275_v55  ;;  %v953_v46 = vmov 1966171168   ;;  %p882_p7 = pnand %p881_p3, %p875_p8 }
  0x6f   : > { %v443_v25 = vsel %vm321_vm4, %v442_v19, %v441_v21  ;;  %v490_v48 = vlaneseq }
  0x70   : > { %740 = vmatpush3.bf16.msra.mxu0 %v739_v31  ;;  %v474_v31 = vsel %vm318_vm3, %v473_v8, %v472_v27  ;;  %414 = vst [vmem:[%s1193_s14 + $0x6] sm:$0x1] %v406_v35 }
  0x71   : > { %741 = vmatprep.subr.bf16.mxu0 %v950_v0  ;;  %v476_v41 = vsel %vm321_vm4, %v475_v12, %v474_v31  ;;  %v491_v51 = vshrl.u32 %v490_v48, 7 }
  0x72   : > { %v478_v43 = vsel %vm324_vm5, %v477_v16, %v476_v41 }
  0x74   : > { %743 = vmatpush3.bf16.msra.mxu0 %v742_v38  ;;  %v409_v38 = vsub.f32 0.0, %v278_v3 }
  0x75   : > { %744 = vmatprep.subr.bf16.mxu0 %v950_v0  ;;  %v277_v0 = vld [vmem:[%s1138_s19 + $0xb] sm:$0x1] }
  0x76   : > { %v425_v13 = vmul.f32 %v419_v56, %v277_v0  ;;  %v408_v37 = vsub.f32 0.0, %v277_v0  ;;  %417 = vst [vmem:[%s1193_s14 + $0xc] sm:$0x1] %v409_v38 }
  0x78   : > { %746 = vmatpush3.bf16.msra.mxu0 %v745_v44  ;;  %v444_v22 = vrot.slane %v425_v13, 3  ;;  %416 = vst [vmem:[%s1193_s14 + $0xa] sm:$0x1] %v408_v37  ;;  %v480_v44 = vsel %vm327_vm6, %v479_v24, %v478_v43 }
  0x79   : > { %v482_v45 = vsel %vm330_vm7, %v481_v28, %v480_v44 }
  0x7a   : > { %v445_v29 = vsel %vm324_vm5, %v444_v22, %v443_v25 }
  0x7b   : > { %721 = vmatmul.mubr.f32.vlgmr.msra.gmra.mrb[0].mxu0 %v331_v47  ;;  %v447_v40 = vsel %vm327_vm6, %v446_v26, %v445_v29  ;;  %v488_v47 = vunpack.c.l.s4 %v953_v46 }
  0x7c   : > { %v449_v42 = vsel %vm330_vm7, %v448_v30, %v447_v40 }
  0x7d   : > { %v489_v50 = vunpack.c.0.s8 %v488_v47 }
  0x7f   : > { %v492_v56 = vsub.s32 %v489_v50, %v491_v51 }
 0x14e   : > { %v399_v52 = vpop.f32.mrb[0].mxu0 }
 0x14f   : > { %v400_v53 = vadd.f32 %v659_v49, %v399_v52  ;;  %v722_v54 = vpop.f32.mrb[1].mxu0 }
 0x151   : > { %v451_v55 = vsub.f32 %v400_v53, %v449_v42 }
 0x153   : > { %v484_v57 = vadd.f32 %v482_v45, %v451_v55 }
 0x155   : > { %v486_v58 = vcombine.high %v484_v57, %v484_v57  ;;  %v493_v59 = vrot.slane %v484_v57, %v492_v56 }
 0x157   : > { %v500_v60 = vrot.slane %v486_v58, %v492_v56  ;;  %v501_v61 = vcombine.high %v493_v59, %v493_v59  ;;  %v509_v62 = vrot.slane %v493_v59, %v492_v56  ;;  %660 = vst.sshfl [vmem:[%s1193_s14 + $0x1] sm:$0x1 pattern:$0x73625140] %v493_v59 }
 0x159   : > { %v502_v63 = vcombine.high %v500_v60, %v500_v60  ;;  %v516_v0 = vrot.slane %v500_v60, %v492_v56  ;;  %v523_v1 = vrot.slane %v501_v61, %v492_v56  ;;  %v531_v2 = vcombine.high %v509_v62, %v509_v62  ;;  %661 = vst.sshfl [vmem:[%s1193_s14 + $0x3] sm:$0x1 pattern:$0x73625140] %v501_v61 }
 0x15a   : > { %662 = vst.sshfl [vmem:[%s1193_s14 + $0x9] sm:$0x1 pattern:$0x73625140] %v500_v60 }
 0x15b   : > { %v530_v3 = vrot.slane %v502_v63, %v492_v56  ;;  %v532_v4 = vcombine.high %v516_v0, %v516_v0  ;;  %v533_v5 = vcombine.high %v523_v1, %v523_v1  ;;  %545 = vst [vmem:[%s1193_s14 + $0x5] sm:$0x1] %v531_v2  ;;  %663 = vst.sshfl [vmem:[%s1193_s14 + $0xb] sm:$0x1 pattern:$0x73625140] %v502_v63 }
 0x15d   : > { %v534_v6 = vcombine.high %v530_v3, %v530_v3  ;;  %546 = vst [vmem:[%s1193_s14 + $0x7] sm:$0x1] %v533_v5  ;;  %549 = vst [vmem:[%s1193_s14 + $0xd] sm:$0x1] %v532_v4 }
 0x15f   : > { %550 = vst [vmem:[%s1193_s14 + $0xf] sm:$0x1] %v534_v6 }
 0x160   : > { %885 = shalt.err (!%p882_p7)
}
 0x161   : > { %s886_s17 = scalar_lea.hbm %s1222_s11, 256  ;;  %s890_s26 = scalar_lea.hbm %s1276_s5, 512 }
 0x162   : > { %p887_p9 = scmp.ne.s32.totalorder %s1222_s11, %s886_s17  ;;  %p891_p5 = scmp.lt.u32.totalorder %s1222_s11, %s1276_s5 }
 0x163   : > { %p892_p11 = scmp.lt.u32.totalorder %s890_s26, %s886_s17  ;;  %p894_p4 = scmp.lt.u32.totalorder %s886_s17, %s1222_s11 }
 0x164   : > { %p888_p2 = pnand %p887_p9, %p1084_p12 }
 0x165   : > { %p893_p1 = por %p892_p11, %p891_p5 }
 0x166   : > { %p889_p0 = pneg %p888_p2 }
 0x167   : > { %p895_p6 = por %p894_p4, %p893_p1 }
 0x169   : > { %p896_p8 = pnand %p895_p6, %p889_p0 }
 0x16b   : > { %899 = shalt.err (!%p896_p8)
}
 0x16c   : > { %s955_s8 = smov 32   ;;  %s956_s9 = smov 2  }
 0x16d   : > { %753 = dma.vmem_to_hbm [thread:$0]  (%p1084_p12), %s1224_s20, 256, %s1222_s11, %s552_s0, %s955_s8, %s955_s8, %s956_s9  }
 0x16e PF: > { %s580_s15 = sand.u32 1, %s930_s22   ;;  %p1291_p10 = scmp.ne.s32.totalorder %s1281_s27, 0 }
 0x16f   : > { %p1292_p13 = scmp.ge.s32.totalorder %s942_s25, 2  ;;  %s581_s21 = scalar_lea.sflag [#allocation6], %s580_s15 }
 0x171   : > { %p764_p3 = pnand %p1292_p13, %p1291_p10 }
 0x173   : > { %925 = dma.done.wait (!%p764_p3), %s581_s21, 256  }
 0x174   : > { %927 = vsyncadd (!%p764_p3), %s581_s21, 4294967040  ;;  %p21_p7 = scmp.ge.s32.totalorder %s1049_s7, 4   ;;  %s1293_s22 = smov %s934_s23 }
 0x175   : > { %s1294_s23 = smov %s938_s24  ;;  %s1295_s24 = smov %s1080_s1 }
 0x176   : > { %s1296_s25 = smov %s1049_s7  ;;  %23 = sbr.rel (!%p21_p7) target bundleno = 9 (0x9), region = 89 }
 0x17d   :  { %586 = vsyncpa [#allocation5], 1 }
 0x17e   :  { %588 = vsyncpa [#allocation5 + $0x1], 1 }
 0x17f   :  { %589 = vsyncpa [#allocation8], 1 }
 0x180   :  { %590 = vsyncpa [#allocation6], 1 }
 0x181   :  { %592 = vsyncpa [#allocation6 + $0x1], 1 }

</bundles_post_ra>
